<compile_context>
chip_gen: v5e
topology: v5e:2x2
jax: 0.10.0
libtpu: 0.0.40
codegen_flags: <defaults>
</compile_context>

<pallas_src>
import jax
import jax.numpy as jnp
from jax.experimental import pallas as pl
from jax.experimental.pallas import tpu as pltpu

# ----------------------------- DPCNN config ---------------------------------
CLASS_NUM = 6      # len(class_list)
VOCAB = 64         # rows of the (synthetic) pretrained embedding table
EMB = 32           # embedding_len
CH = 32            # args['out_channels']
LAYERS = 2         # args['layer']
SEQ = 16           # sequence length (survives LAYERS rounds of MaxPool1d(3,2): 16 -> 7 -> 3)
NPAD = 128         # classifier output padded to one full 128-lane vreg


# ------------------------------ fused kernel --------------------------------
def _dpcnn_kernel(emb_ref, wr_ref, br_ref, w1_ref, b1_ref, w2_ref, b2_ref,
                  wf_ref, bf_ref, out_ref):
    f32 = jnp.float32

    def shift_mats(length):
        # Exact 0/1 shift matrices: (prev@x)[i]=x[i-1], (next@x)[i]=x[i+1], (next2@x)[i]=x[i+2]
        r = jax.lax.broadcasted_iota(jnp.int32, (length, length), 0)
        c = jax.lax.broadcasted_iota(jnp.int32, (length, length), 1)
        prev_m = (c == r - 1).astype(f32)
        next_m = (c == r + 1).astype(f32)
        next2_m = (c == r + 2).astype(f32)
        return prev_m, next_m, next2_m

    def conv3(x, taps, bias):
        # 1-D conv, kernel=3, padding=1, along rows; channels live on lanes.
        # torch tap order: k=0 -> x[l-1], k=1 -> x[l], k=2 -> x[l+1]
        prev_m, next_m, _ = shift_mats(x.shape[0])
        x_prev = jnp.dot(prev_m, x, preferred_element_type=f32)
        x_next = jnp.dot(next_m, x, preferred_element_type=f32)
        y = (jnp.dot(x_prev, taps[0], preferred_element_type=f32)
             + jnp.dot(x, taps[1], preferred_element_type=f32)
             + jnp.dot(x_next, taps[2], preferred_element_type=f32))
        return y + bias

    def conv2_block(p, w1, b1, w2, b2):
        # nn.Sequential(ReLU, Conv1d, ReLU, Conv1d)
        a = jnp.maximum(p, 0.0)
        h = conv3(a, w1, b1)
        a = jnp.maximum(h, 0.0)
        return conv3(a, w2, b2)

    def max_pool_3_2(x):
        # MaxPool1d(kernel=3, stride=2, padding=0) along rows.
        length = x.shape[0]
        out_len = (length - 3) // 2 + 1
        _, next_m, next2_m = shift_mats(length)
        x1 = jnp.dot(next_m, x, preferred_element_type=f32)    # x[i+1]
        x2 = jnp.dot(next2_m, x, preferred_element_type=f32)   # x[i+2]
        m = jnp.maximum(jnp.maximum(x, x1), x2)                 # window max anchored at i
        # keep rows 0, 2, 4, ... (all kept windows are fully in-bounds)
        r = jax.lax.broadcasted_iota(jnp.int32, (out_len, length), 0)
        c = jax.lax.broadcasted_iota(jnp.int32, (out_len, length), 1)
        sel = (c == 2 * r).astype(f32)
        return jnp.dot(sel, m, preferred_element_type=f32)

    emb = emb_ref[0]                                     # (S, E) for this batch element
    wr = (wr_ref[0], wr_ref[1], wr_ref[2])               # each (E, C)
    w1 = (w1_ref[0], w1_ref[1], w1_ref[2])               # each (C, C)
    w2 = (w2_ref[0], w2_ref[1], w2_ref[2])               # each (C, C)
    br, b1, b2 = br_ref[...], b1_ref[...], b2_ref[...]   # (1, C)

    # conv_region: Conv2d(1, C, (3, E), padding=(1, 0)) == kernel-3 conv over
    # sequence positions with the full embedding width as the contraction dim.
    px = conv3(emb, wr, br)                              # (S, C)
    x = px + conv2_block(px, w1, b1, w2, b2)

    for _ in range(LAYERS):                              # static loop, lengths 16 -> 7 -> 3
        px = max_pool_3_2(x)
        x = px + conv2_block(px, w1, b1, w2, b2)

    g = jnp.max(x, axis=0, keepdims=True)                # global max pool -> (1, C)
    logits = jnp.dot(g, wf_ref[...], preferred_element_type=f32) + bf_ref[...]
    out_ref[0] = logits.astype(out_ref.dtype)            # lane-dense (1, 128) store


# ------------------------------ wrapper --------------------------------------
def dpcnn_forward(params, tokens):
    """Fused Pallas DPCNN forward: tokens (B, S) int32 -> logits (B, CLASS_NUM)."""
    B, S = tokens.shape
    # TODO(synk): embedding row gather (frozen table) stays in plain JAX; it is a
    # single tiny op feeding the fused kernel.
    emb = params["embedding"][tokens]                    # (B, S, E)

    out = pl.pallas_call(
        _dpcnn_kernel,
        out_shape=jax.ShapeDtypeStruct((B, 1, NPAD), jnp.float32),
        grid=(B,),
        in_specs=[
            pl.BlockSpec((1, S, EMB), lambda b: (b, 0, 0)),    # per-batch activations
            pl.BlockSpec((3, EMB, CH), lambda b: (0, 0, 0)),   # weights: constant index_map
            pl.BlockSpec((1, CH), lambda b: (0, 0)),           #   -> stay VMEM-resident
            pl.BlockSpec((3, CH, CH), lambda b: (0, 0, 0)),
            pl.BlockSpec((1, CH), lambda b: (0, 0)),
            pl.BlockSpec((3, CH, CH), lambda b: (0, 0, 0)),
            pl.BlockSpec((1, CH), lambda b: (0, 0)),
            pl.BlockSpec((CH, NPAD), lambda b: (0, 0)),
            pl.BlockSpec((1, NPAD), lambda b: (0, 0)),
        ],
        out_specs=pl.BlockSpec((1, 1, NPAD), lambda b: (b, 0, 0)),
        compiler_params=pltpu.CompilerParams(
            dimension_semantics=("parallel",),    # batch sharded over v7x's two TCs
            vmem_limit_bytes=32 * 1024 * 1024,    # well under v7x's 64 MiB VMEM
        ),
    )(emb, params["wr"], params["br"], params["w1"], params["b1"],
      params["w2"], params["b2"], params["wf_pad"], params["bf_pad"])

    return out[:, 0, :CLASS_NUM]


# --------------------------- plain-JAX reference -----------------------------
def dpcnn_reference(params, tokens):
    """Mirror of the PyTorch DPCNN forward using lax convolutions (for checking)."""
    hi = jax.lax.Precision.HIGHEST
    emb = params["embedding"][tokens]                                  # (B, S, E)

    # conv_region: Conv2d(1, C, (3, E), padding=(1, 0))
    w_region = jnp.transpose(params["wr"], (2, 0, 1))[:, None, :, :]   # (C, 1, 3, E)
    px = jax.lax.conv_general_dilated(
        emb[:, None, :, :], w_region, window_strides=(1, 1),
        padding=((1, 1), (0, 0)), dimension_numbers=("NCHW", "OIHW", "NCHW"),
        precision=hi)[:, :, :, 0] + params["br"][0][None, :, None]     # (B, C, S)

    def conv1d(x, taps, bias):
        w = jnp.transpose(taps, (2, 1, 0))                             # (Cout, Cin, 3)
        y = jax.lax.conv_general_dilated(
            x, w, window_strides=(1,), padding=((1, 1),),
            dimension_numbers=("NCH", "OIH", "NCH"), precision=hi)
        return y + bias[0][None, :, None]

    def conv2_block(p):
        a = jnp.maximum(p, 0.0)
        h = conv1d(a, params["w1"], params["b1"])
        a = jnp.maximum(h, 0.0)
        return conv1d(a, params["w2"], params["b2"])

    x = px + conv2_block(px)
    for _ in range(LAYERS):
        px = jax.lax.reduce_window(x, -jnp.inf, jax.lax.max,
                                   (1, 1, 3), (1, 1, 2), "VALID")
        x = px + conv2_block(px)

    g = jnp.max(x, axis=2)                                             # (B, C)
    return jnp.dot(g, params["wf"], precision=hi) + params["bf"]


# --------------------------- deterministic weights ---------------------------
def init_params(key):
    ks = jax.random.split(key, 6)
    s = 0.1
    wf = s * jax.random.normal(ks[4], (CH, CLASS_NUM), jnp.float32)
    bf = 0.01 * jnp.ones((CLASS_NUM,), jnp.float32)
    return {
        # frozen "pretrained" embedding (synthetic stand-in for np.load(trimmed_path))
        "embedding": jax.random.normal(ks[0], (VOCAB, EMB), jnp.float32),
        # conv_region weight stored per-tap as (3, E, C)  (== torch (C,1,3,E) transposed)
        "wr": s * jax.random.normal(ks[1], (3, EMB, CH), jnp.float32),
        "br": 0.01 * jnp.ones((1, CH), jnp.float32),
        # conv2 = ReLU -> Conv1d -> ReLU -> Conv1d; weights per-tap (3, Cin, Cout)
        "w1": s * jax.random.normal(ks[2], (3, CH, CH), jnp.float32),
        "b1": 0.01 * jnp.ones((1, CH), jnp.float32),
        "w2": s * jax.random.normal(ks[3], (3, CH, CH), jnp.float32),
        "b2": 0.01 * jnp.ones((1, CH), jnp.float32),
        # classifier nn.Linear(C, class_num) as (in, out); zero-padded copy for the kernel
        "wf": wf,
        "bf": bf,
        "wf_pad": jnp.zeros((CH, NPAD), jnp.float32).at[:, :CLASS_NUM].set(wf),
        "bf_pad": jnp.zeros((1, NPAD), jnp.float32).at[0, :CLASS_NUM].set(bf),
    }


# ----------------------------------- main ------------------------------------
if __name__ == "__main__":
    key = jax.random.PRNGKey(0)
    k_param, k_tok = jax.random.split(key)
    params = init_params(k_param)

    B = 2
    tokens = jax.random.randint(k_tok, (B, SEQ), 0, VOCAB, dtype=jnp.int32)

    logits = jax.block_until_ready(jax.jit(dpcnn_forward)(params, tokens))
    ref = jax.block_until_ready(jax.jit(dpcnn_reference)(params, tokens))

    assert logits.shape == (B, CLASS_NUM)
    assert logits.dtype == jnp.float32
    assert bool(jnp.all(jnp.isfinite(logits)))
    if not bool(jnp.allclose(logits, ref, rtol=1e-2, atol=1e-3)):
        raise AssertionError(
            "Pallas DPCNN mismatch vs JAX reference: max abs err = "
            f"{float(jnp.max(jnp.abs(logits - ref)))}")
    print("KERNEL_OK")
</pallas_src>

<mosaic_0001>
module attributes {stable_mosaic.version = 11 : i64} {
  func.func @_dpcnn_kernel(%arg0: i32, %arg1: memref<1x16x32xf32, #tpu.memory_space<vmem>>, %arg2: memref<3x32x32xf32, #tpu.memory_space<vmem>>, %arg3: memref<1x32xf32, #tpu.memory_space<vmem>>, %arg4: memref<3x32x32xf32, #tpu.memory_space<vmem>>, %arg5: memref<1x32xf32, #tpu.memory_space<vmem>>, %arg6: memref<3x32x32xf32, #tpu.memory_space<vmem>>, %arg7: memref<1x32xf32, #tpu.memory_space<vmem>>, %arg8: memref<32x128xf32, #tpu.memory_space<vmem>>, %arg9: memref<1x128xf32, #tpu.memory_space<vmem>>, %arg10: memref<1x1x128xf32, #tpu.memory_space<vmem>>) attributes {dimension_semantics = [#tpu.dimension_semantics<parallel>], iteration_bounds = array<i64: 2>, scalar_prefetch = 0 : i64, scratch_operands = 0 : i64, tpu.core_type = #tpu.core_type<tc>, window_params = [{transform_indices = @transform_0, window_bounds = array<i64: 1, 16, 32>}, {pipeline_mode = #tpu.pipeline_mode<synchronous>, transform_indices = @transform_1, window_bounds = array<i64: 3, 32, 32>}, {pipeline_mode = #tpu.pipeline_mode<synchronous>, transform_indices = @transform_2, window_bounds = array<i64: 1, 32>}, {pipeline_mode = #tpu.pipeline_mode<synchronous>, transform_indices = @transform_3, window_bounds = array<i64: 3, 32, 32>}, {pipeline_mode = #tpu.pipeline_mode<synchronous>, transform_indices = @transform_4, window_bounds = array<i64: 1, 32>}, {pipeline_mode = #tpu.pipeline_mode<synchronous>, transform_indices = @transform_5, window_bounds = array<i64: 3, 32, 32>}, {pipeline_mode = #tpu.pipeline_mode<synchronous>, transform_indices = @transform_6, window_bounds = array<i64: 1, 32>}, {pipeline_mode = #tpu.pipeline_mode<synchronous>, transform_indices = @transform_7, window_bounds = array<i64: 32, 128>}, {pipeline_mode = #tpu.pipeline_mode<synchronous>, transform_indices = @transform_8, window_bounds = array<i64: 1, 128>}, {transform_indices = @transform_9, window_bounds = array<i64: 1, 1, 128>}]} {
    %c0 = arith.constant 0 : index
    %c0_0 = arith.constant 0 : index
    %c0_1 = arith.constant 0 : index
    %0 = vector.load %arg1[%c0, %c0_0, %c0_1] : memref<1x16x32xf32, #tpu.memory_space<vmem>>, vector<1x16x32xf32>
    %1 = vector.shape_cast %0 : vector<1x16x32xf32> to vector<16x32xf32>
    %c0_2 = arith.constant 0 : index
    %c0_3 = arith.constant 0 : index
    %c0_4 = arith.constant 0 : index
    %2 = vector.load %arg2[%c0_2, %c0_3, %c0_4] : memref<3x32x32xf32, #tpu.memory_space<vmem>>, vector<1x32x32xf32>
    %3 = vector.shape_cast %2 : vector<1x32x32xf32> to vector<32x32xf32>
    %c1 = arith.constant 1 : index
    %c0_5 = arith.constant 0 : index
    %c0_6 = arith.constant 0 : index
    %4 = vector.load %arg2[%c1, %c0_5, %c0_6] : memref<3x32x32xf32, #tpu.memory_space<vmem>>, vector<1x32x32xf32>
    %5 = vector.shape_cast %4 : vector<1x32x32xf32> to vector<32x32xf32>
    %c2 = arith.constant 2 : index
    %c0_7 = arith.constant 0 : index
    %c0_8 = arith.constant 0 : index
    %6 = vector.load %arg2[%c2, %c0_7, %c0_8] : memref<3x32x32xf32, #tpu.memory_space<vmem>>, vector<1x32x32xf32>
    %7 = vector.shape_cast %6 : vector<1x32x32xf32> to vector<32x32xf32>
    %c0_9 = arith.constant 0 : index
    %c0_10 = arith.constant 0 : index
    %c0_11 = arith.constant 0 : index
    %8 = vector.load %arg4[%c0_9, %c0_10, %c0_11] : memref<3x32x32xf32, #tpu.memory_space<vmem>>, vector<1x32x32xf32>
    %9 = vector.shape_cast %8 : vector<1x32x32xf32> to vector<32x32xf32>
    %c1_12 = arith.constant 1 : index
    %c0_13 = arith.constant 0 : index
    %c0_14 = arith.constant 0 : index
    %10 = vector.load %arg4[%c1_12, %c0_13, %c0_14] : memref<3x32x32xf32, #tpu.memory_space<vmem>>, vector<1x32x32xf32>
    %11 = vector.shape_cast %10 : vector<1x32x32xf32> to vector<32x32xf32>
    %c2_15 = arith.constant 2 : index
    %c0_16 = arith.constant 0 : index
    %c0_17 = arith.constant 0 : index
    %12 = vector.load %arg4[%c2_15, %c0_16, %c0_17] : memref<3x32x32xf32, #tpu.memory_space<vmem>>, vector<1x32x32xf32>
    %13 = vector.shape_cast %12 : vector<1x32x32xf32> to vector<32x32xf32>
    %c0_18 = arith.constant 0 : index
    %c0_19 = arith.constant 0 : index
    %c0_20 = arith.constant 0 : index
    %14 = vector.load %arg6[%c0_18, %c0_19, %c0_20] : memref<3x32x32xf32, #tpu.memory_space<vmem>>, vector<1x32x32xf32>
    %15 = vector.shape_cast %14 : vector<1x32x32xf32> to vector<32x32xf32>
    %c1_21 = arith.constant 1 : index
    %c0_22 = arith.constant 0 : index
    %c0_23 = arith.constant 0 : index
    %16 = vector.load %arg6[%c1_21, %c0_22, %c0_23] : memref<3x32x32xf32, #tpu.memory_space<vmem>>, vector<1x32x32xf32>
    %17 = vector.shape_cast %16 : vector<1x32x32xf32> to vector<32x32xf32>
    %c2_24 = arith.constant 2 : index
    %c0_25 = arith.constant 0 : index
    %c0_26 = arith.constant 0 : index
    %18 = vector.load %arg6[%c2_24, %c0_25, %c0_26] : memref<3x32x32xf32, #tpu.memory_space<vmem>>, vector<1x32x32xf32>
    %19 = vector.shape_cast %18 : vector<1x32x32xf32> to vector<32x32xf32>
    %c0_27 = arith.constant 0 : index
    %c0_28 = arith.constant 0 : index
    %20 = vector.load %arg3[%c0_27, %c0_28] : memref<1x32xf32, #tpu.memory_space<vmem>>, vector<1x32xf32>
    %c0_29 = arith.constant 0 : index
    %c0_30 = arith.constant 0 : index
    %21 = vector.load %arg5[%c0_29, %c0_30] : memref<1x32xf32, #tpu.memory_space<vmem>>, vector<1x32xf32>
    %c0_31 = arith.constant 0 : index
    %c0_32 = arith.constant 0 : index
    %22 = vector.load %arg7[%c0_31, %c0_32] : memref<1x32xf32, #tpu.memory_space<vmem>>, vector<1x32xf32>
    %23 = tpu.iota {dimensions = array<i32: 0>} : vector<16x16xi32>
    %24 = tpu.iota {dimensions = array<i32: 1>} : vector<16x16xi32>
    %c1_i32 = arith.constant 1 : i32
    %25 = vector.broadcast %c1_i32 : i32 to vector<16x16xi32>
    %26 = arith.subi %23, %25 : vector<16x16xi32>
    %27 = arith.cmpi eq, %24, %26 : vector<16x16xi32>
    %28 = arith.extui %27 : vector<16x16xi1> to vector<16x16xi32>
    %29 = arith.sitofp %28 : vector<16x16xi32> to vector<16x16xf32>
    %c1_i32_33 = arith.constant 1 : i32
    %30 = vector.broadcast %c1_i32_33 : i32 to vector<16x16xi32>
    %31 = arith.addi %23, %30 : vector<16x16xi32>
    %32 = arith.cmpi eq, %24, %31 : vector<16x16xi32>
    %33 = arith.extui %32 : vector<16x16xi1> to vector<16x16xi32>
    %34 = arith.sitofp %33 : vector<16x16xi32> to vector<16x16xf32>
    %cst = arith.constant dense<0.000000e+00> : vector<16x32xf32>
    %35 = tpu.matmul %29, %1, %cst {dimension_numbers = #tpu.dot_dimension_numbers<[1], [0], [0], [1], [0, 0, 1, 1], [], []>} : vector<16x16xf32>, vector<16x32xf32>, vector<16x32xf32> -> vector<16x32xf32>
    %cst_34 = arith.constant dense<0.000000e+00> : vector<16x32xf32>
    %36 = tpu.matmul %34, %1, %cst_34 {dimension_numbers = #tpu.dot_dimension_numbers<[1], [0], [0], [1], [0, 0, 1, 1], [], []>} : vector<16x16xf32>, vector<16x32xf32>, vector<16x32xf32> -> vector<16x32xf32>
    %cst_35 = arith.constant dense<0.000000e+00> : vector<16x32xf32>
    %37 = tpu.matmul %35, %3, %cst_35 {dimension_numbers = #tpu.dot_dimension_numbers<[1], [0], [0], [1], [0, 0, 1, 1], [], []>} : vector<16x32xf32>, vector<32x32xf32>, vector<16x32xf32> -> vector<16x32xf32>
    %cst_36 = arith.constant dense<0.000000e+00> : vector<16x32xf32>
    %38 = tpu.matmul %1, %5, %cst_36 {dimension_numbers = #tpu.dot_dimension_numbers<[1], [0], [0], [1], [0, 0, 1, 1], [], []>} : vector<16x32xf32>, vector<32x32xf32>, vector<16x32xf32> -> vector<16x32xf32>
    %39 = arith.addf %37, %38 : vector<16x32xf32>
    %cst_37 = arith.constant dense<0.000000e+00> : vector<16x32xf32>
    %40 = tpu.matmul %36, %7, %cst_37 {dimension_numbers = #tpu.dot_dimension_numbers<[1], [0], [0], [1], [0, 0, 1, 1], [], []>} : vector<16x32xf32>, vector<32x32xf32>, vector<16x32xf32> -> vector<16x32xf32>
    %41 = arith.addf %39, %40 : vector<16x32xf32>
    %42 = vector.broadcast %20 : vector<1x32xf32> to vector<16x32xf32>
    %43 = arith.addf %41, %42 : vector<16x32xf32>
    %cst_38 = arith.constant 0.000000e+00 : f32
    %44 = vector.broadcast %cst_38 : f32 to vector<16x32xf32>
    %45 = arith.maximumf %43, %44 : vector<16x32xf32>
    %46 = tpu.iota {dimensions = array<i32: 0>} : vector<16x16xi32>
    %47 = tpu.iota {dimensions = array<i32: 1>} : vector<16x16xi32>
    %c1_i32_39 = arith.constant 1 : i32
    %48 = vector.broadcast %c1_i32_39 : i32 to vector<16x16xi32>
    %49 = arith.subi %46, %48 : vector<16x16xi32>
    %50 = arith.cmpi eq, %47, %49 : vector<16x16xi32>
    %51 = arith.extui %50 : vector<16x16xi1> to vector<16x16xi32>
    %52 = arith.sitofp %51 : vector<16x16xi32> to vector<16x16xf32>
    %c1_i32_40 = arith.constant 1 : i32
    %53 = vector.broadcast %c1_i32_40 : i32 to vector<16x16xi32>
    %54 = arith.addi %46, %53 : vector<16x16xi32>
    %55 = arith.cmpi eq, %47, %54 : vector<16x16xi32>
    %56 = arith.extui %55 : vector<16x16xi1> to vector<16x16xi32>
    %57 = arith.sitofp %56 : vector<16x16xi32> to vector<16x16xf32>
    %cst_41 = arith.constant dense<0.000000e+00> : vector<16x32xf32>
    %58 = tpu.matmul %52, %45, %cst_41 {dimension_numbers = #tpu.dot_dimension_numbers<[1], [0], [0], [1], [0, 0, 1, 1], [], []>} : vector<16x16xf32>, vector<16x32xf32>, vector<16x32xf32> -> vector<16x32xf32>
    %cst_42 = arith.constant dense<0.000000e+00> : vector<16x32xf32>
    %59 = tpu.matmul %57, %45, %cst_42 {dimension_numbers = #tpu.dot_dimension_numbers<[1], [0], [0], [1], [0, 0, 1, 1], [], []>} : vector<16x16xf32>, vector<16x32xf32>, vector<16x32xf32> -> vector<16x32xf32>
    %cst_43 = arith.constant dense<0.000000e+00> : vector<16x32xf32>
    %60 = tpu.matmul %58, %9, %cst_43 {dimension_numbers = #tpu.dot_dimension_numbers<[1], [0], [0], [1], [0, 0, 1, 1], [], []>} : vector<16x32xf32>, vector<32x32xf32>, vector<16x32xf32> -> vector<16x32xf32>
    %cst_44 = arith.constant dense<0.000000e+00> : vector<16x32xf32>
    %61 = tpu.matmul %45, %11, %cst_44 {dimension_numbers = #tpu.dot_dimension_numbers<[1], [0], [0], [1], [0, 0, 1, 1], [], []>} : vector<16x32xf32>, vector<32x32xf32>, vector<16x32xf32> -> vector<16x32xf32>
    %62 = arith.addf %60, %61 : vector<16x32xf32>
    %cst_45 = arith.constant dense<0.000000e+00> : vector<16x32xf32>
    %63 = tpu.matmul %59, %13, %cst_45 {dimension_numbers = #tpu.dot_dimension_numbers<[1], [0], [0], [1], [0, 0, 1, 1], [], []>} : vector<16x32xf32>, vector<32x32xf32>, vector<16x32xf32> -> vector<16x32xf32>
    %64 = arith.addf %62, %63 : vector<16x32xf32>
    %65 = vector.broadcast %21 : vector<1x32xf32> to vector<16x32xf32>
    %66 = arith.addf %64, %65 : vector<16x32xf32>
    %cst_46 = arith.constant 0.000000e+00 : f32
    %67 = vector.broadcast %cst_46 : f32 to vector<16x32xf32>
    %68 = arith.maximumf %66, %67 : vector<16x32xf32>
    %69 = tpu.iota {dimensions = array<i32: 0>} : vector<16x16xi32>
    %70 = tpu.iota {dimensions = array<i32: 1>} : vector<16x16xi32>
    %c1_i32_47 = arith.constant 1 : i32
    %71 = vector.broadcast %c1_i32_47 : i32 to vector<16x16xi32>
    %72 = arith.subi %69, %71 : vector<16x16xi32>
    %73 = arith.cmpi eq, %70, %72 : vector<16x16xi32>
    %74 = arith.extui %73 : vector<16x16xi1> to vector<16x16xi32>
    %75 = arith.sitofp %74 : vector<16x16xi32> to vector<16x16xf32>
    %c1_i32_48 = arith.constant 1 : i32
    %76 = vector.broadcast %c1_i32_48 : i32 to vector<16x16xi32>
    %77 = arith.addi %69, %76 : vector<16x16xi32>
    %78 = arith.cmpi eq, %70, %77 : vector<16x16xi32>
    %79 = arith.extui %78 : vector<16x16xi1> to vector<16x16xi32>
    %80 = arith.sitofp %79 : vector<16x16xi32> to vector<16x16xf32>
    %cst_49 = arith.constant dense<0.000000e+00> : vector<16x32xf32>
    %81 = tpu.matmul %75, %68, %cst_49 {dimension_numbers = #tpu.dot_dimension_numbers<[1], [0], [0], [1], [0, 0, 1, 1], [], []>} : vector<16x16xf32>, vector<16x32xf32>, vector<16x32xf32> -> vector<16x32xf32>
    %cst_50 = arith.constant dense<0.000000e+00> : vector<16x32xf32>
    %82 = tpu.matmul %80, %68, %cst_50 {dimension_numbers = #tpu.dot_dimension_numbers<[1], [0], [0], [1], [0, 0, 1, 1], [], []>} : vector<16x16xf32>, vector<16x32xf32>, vector<16x32xf32> -> vector<16x32xf32>
    %cst_51 = arith.constant dense<0.000000e+00> : vector<16x32xf32>
    %83 = tpu.matmul %81, %15, %cst_51 {dimension_numbers = #tpu.dot_dimension_numbers<[1], [0], [0], [1], [0, 0, 1, 1], [], []>} : vector<16x32xf32>, vector<32x32xf32>, vector<16x32xf32> -> vector<16x32xf32>
    %cst_52 = arith.constant dense<0.000000e+00> : vector<16x32xf32>
    %84 = tpu.matmul %68, %17, %cst_52 {dimension_numbers = #tpu.dot_dimension_numbers<[1], [0], [0], [1], [0, 0, 1, 1], [], []>} : vector<16x32xf32>, vector<32x32xf32>, vector<16x32xf32> -> vector<16x32xf32>
    %85 = arith.addf %83, %84 : vector<16x32xf32>
    %cst_53 = arith.constant dense<0.000000e+00> : vector<16x32xf32>
    %86 = tpu.matmul %82, %19, %cst_53 {dimension_numbers = #tpu.dot_dimension_numbers<[1], [0], [0], [1], [0, 0, 1, 1], [], []>} : vector<16x32xf32>, vector<32x32xf32>, vector<16x32xf32> -> vector<16x32xf32>
    %87 = arith.addf %85, %86 : vector<16x32xf32>
    %88 = vector.broadcast %22 : vector<1x32xf32> to vector<16x32xf32>
    %89 = arith.addf %87, %88 : vector<16x32xf32>
    %90 = arith.addf %43, %89 : vector<16x32xf32>
    %91 = tpu.iota {dimensions = array<i32: 0>} : vector<16x16xi32>
    %92 = tpu.iota {dimensions = array<i32: 1>} : vector<16x16xi32>
    %c1_i32_54 = arith.constant 1 : i32
    %93 = vector.broadcast %c1_i32_54 : i32 to vector<16x16xi32>
    %94 = arith.addi %91, %93 : vector<16x16xi32>
    %95 = arith.cmpi eq, %92, %94 : vector<16x16xi32>
    %96 = arith.extui %95 : vector<16x16xi1> to vector<16x16xi32>
    %97 = arith.sitofp %96 : vector<16x16xi32> to vector<16x16xf32>
    %c2_i32 = arith.constant 2 : i32
    %98 = vector.broadcast %c2_i32 : i32 to vector<16x16xi32>
    %99 = arith.addi %91, %98 : vector<16x16xi32>
    %100 = arith.cmpi eq, %92, %99 : vector<16x16xi32>
    %101 = arith.extui %100 : vector<16x16xi1> to vector<16x16xi32>
    %102 = arith.sitofp %101 : vector<16x16xi32> to vector<16x16xf32>
    %cst_55 = arith.constant dense<0.000000e+00> : vector<16x32xf32>
    %103 = tpu.matmul %97, %90, %cst_55 {dimension_numbers = #tpu.dot_dimension_numbers<[1], [0], [0], [1], [0, 0, 1, 1], [], []>} : vector<16x16xf32>, vector<16x32xf32>, vector<16x32xf32> -> vector<16x32xf32>
    %cst_56 = arith.constant dense<0.000000e+00> : vector<16x32xf32>
    %104 = tpu.matmul %102, %90, %cst_56 {dimension_numbers = #tpu.dot_dimension_numbers<[1], [0], [0], [1], [0, 0, 1, 1], [], []>} : vector<16x16xf32>, vector<16x32xf32>, vector<16x32xf32> -> vector<16x32xf32>
    %105 = arith.maximumf %90, %103 : vector<16x32xf32>
    %106 = arith.maximumf %105, %104 : vector<16x32xf32>
    %107 = tpu.iota {dimensions = array<i32: 0>} : vector<7x16xi32>
    %108 = tpu.iota {dimensions = array<i32: 1>} : vector<7x16xi32>
    %c2_i32_57 = arith.constant 2 : i32
    %109 = vector.broadcast %c2_i32_57 : i32 to vector<7x16xi32>
    %110 = arith.muli %109, %107 : vector<7x16xi32>
    %111 = arith.cmpi eq, %108, %110 : vector<7x16xi32>
    %112 = arith.extui %111 : vector<7x16xi1> to vector<7x16xi32>
    %113 = arith.sitofp %112 : vector<7x16xi32> to vector<7x16xf32>
    %cst_58 = arith.constant dense<0.000000e+00> : vector<7x32xf32>
    %114 = tpu.matmul %113, %106, %cst_58 {dimension_numbers = #tpu.dot_dimension_numbers<[1], [0], [0], [1], [0, 0, 1, 1], [], []>} : vector<7x16xf32>, vector<16x32xf32>, vector<7x32xf32> -> vector<7x32xf32>
    %cst_59 = arith.constant 0.000000e+00 : f32
    %115 = vector.broadcast %cst_59 : f32 to vector<7x32xf32>
    %116 = arith.maximumf %114, %115 : vector<7x32xf32>
    %117 = tpu.iota {dimensions = array<i32: 0>} : vector<7x7xi32>
    %118 = tpu.iota {dimensions = array<i32: 1>} : vector<7x7xi32>
    %c1_i32_60 = arith.constant 1 : i32
    %119 = vector.broadcast %c1_i32_60 : i32 to vector<7x7xi32>
    %120 = arith.subi %117, %119 : vector<7x7xi32>
    %121 = arith.cmpi eq, %118, %120 : vector<7x7xi32>
    %122 = arith.extui %121 : vector<7x7xi1> to vector<7x7xi32>
    %123 = arith.sitofp %122 : vector<7x7xi32> to vector<7x7xf32>
    %c1_i32_61 = arith.constant 1 : i32
    %124 = vector.broadcast %c1_i32_61 : i32 to vector<7x7xi32>
    %125 = arith.addi %117, %124 : vector<7x7xi32>
    %126 = arith.cmpi eq, %118, %125 : vector<7x7xi32>
    %127 = arith.extui %126 : vector<7x7xi1> to vector<7x7xi32>
    %128 = arith.sitofp %127 : vector<7x7xi32> to vector<7x7xf32>
    %cst_62 = arith.constant dense<0.000000e+00> : vector<7x32xf32>
    %129 = tpu.matmul %123, %116, %cst_62 {dimension_numbers = #tpu.dot_dimension_numbers<[1], [0], [0], [1], [0, 0, 1, 1], [], []>} : vector<7x7xf32>, vector<7x32xf32>, vector<7x32xf32> -> vector<7x32xf32>
    %cst_63 = arith.constant dense<0.000000e+00> : vector<7x32xf32>
    %130 = tpu.matmul %128, %116, %cst_63 {dimension_numbers = #tpu.dot_dimension_numbers<[1], [0], [0], [1], [0, 0, 1, 1], [], []>} : vector<7x7xf32>, vector<7x32xf32>, vector<7x32xf32> -> vector<7x32xf32>
    %cst_64 = arith.constant dense<0.000000e+00> : vector<7x32xf32>
    %131 = tpu.matmul %129, %9, %cst_64 {dimension_numbers = #tpu.dot_dimension_numbers<[1], [0], [0], [1], [0, 0, 1, 1], [], []>} : vector<7x32xf32>, vector<32x32xf32>, vector<7x32xf32> -> vector<7x32xf32>
    %cst_65 = arith.constant dense<0.000000e+00> : vector<7x32xf32>
    %132 = tpu.matmul %116, %11, %cst_65 {dimension_numbers = #tpu.dot_dimension_numbers<[1], [0], [0], [1], [0, 0, 1, 1], [], []>} : vector<7x32xf32>, vector<32x32xf32>, vector<7x32xf32> -> vector<7x32xf32>
    %133 = arith.addf %131, %132 : vector<7x32xf32>
    %cst_66 = arith.constant dense<0.000000e+00> : vector<7x32xf32>
    %134 = tpu.matmul %130, %13, %cst_66 {dimension_numbers = #tpu.dot_dimension_numbers<[1], [0], [0], [1], [0, 0, 1, 1], [], []>} : vector<7x32xf32>, vector<32x32xf32>, vector<7x32xf32> -> vector<7x32xf32>
    %135 = arith.addf %133, %134 : vector<7x32xf32>
    %136 = vector.broadcast %21 : vector<1x32xf32> to vector<7x32xf32>
    %137 = arith.addf %135, %136 : vector<7x32xf32>
    %cst_67 = arith.constant 0.000000e+00 : f32
    %138 = vector.broadcast %cst_67 : f32 to vector<7x32xf32>
    %139 = arith.maximumf %137, %138 : vector<7x32xf32>
    %140 = tpu.iota {dimensions = array<i32: 0>} : vector<7x7xi32>
    %141 = tpu.iota {dimensions = array<i32: 1>} : vector<7x7xi32>
    %c1_i32_68 = arith.constant 1 : i32
    %142 = vector.broadcast %c1_i32_68 : i32 to vector<7x7xi32>
    %143 = arith.subi %140, %142 : vector<7x7xi32>
    %144 = arith.cmpi eq, %141, %143 : vector<7x7xi32>
    %145 = arith.extui %144 : vector<7x7xi1> to vector<7x7xi32>
    %146 = arith.sitofp %145 : vector<7x7xi32> to vector<7x7xf32>
    %c1_i32_69 = arith.constant 1 : i32
    %147 = vector.broadcast %c1_i32_69 : i32 to vector<7x7xi32>
    %148 = arith.addi %140, %147 : vector<7x7xi32>
    %149 = arith.cmpi eq, %141, %148 : vector<7x7xi32>
    %150 = arith.extui %149 : vector<7x7xi1> to vector<7x7xi32>
    %151 = arith.sitofp %150 : vector<7x7xi32> to vector<7x7xf32>
    %cst_70 = arith.constant dense<0.000000e+00> : vector<7x32xf32>
    %152 = tpu.matmul %146, %139, %cst_70 {dimension_numbers = #tpu.dot_dimension_numbers<[1], [0], [0], [1], [0, 0, 1, 1], [], []>} : vector<7x7xf32>, vector<7x32xf32>, vector<7x32xf32> -> vector<7x32xf32>
    %cst_71 = arith.constant dense<0.000000e+00> : vector<7x32xf32>
    %153 = tpu.matmul %151, %139, %cst_71 {dimension_numbers = #tpu.dot_dimension_numbers<[1], [0], [0], [1], [0, 0, 1, 1], [], []>} : vector<7x7xf32>, vector<7x32xf32>, vector<7x32xf32> -> vector<7x32xf32>
    %cst_72 = arith.constant dense<0.000000e+00> : vector<7x32xf32>
    %154 = tpu.matmul %152, %15, %cst_72 {dimension_numbers = #tpu.dot_dimension_numbers<[1], [0], [0], [1], [0, 0, 1, 1], [], []>} : vector<7x32xf32>, vector<32x32xf32>, vector<7x32xf32> -> vector<7x32xf32>
    %cst_73 = arith.constant dense<0.000000e+00> : vector<7x32xf32>
    %155 = tpu.matmul %139, %17, %cst_73 {dimension_numbers = #tpu.dot_dimension_numbers<[1], [0], [0], [1], [0, 0, 1, 1], [], []>} : vector<7x32xf32>, vector<32x32xf32>, vector<7x32xf32> -> vector<7x32xf32>
    %156 = arith.addf %154, %155 : vector<7x32xf32>
    %cst_74 = arith.constant dense<0.000000e+00> : vector<7x32xf32>
    %157 = tpu.matmul %153, %19, %cst_74 {dimension_numbers = #tpu.dot_dimension_numbers<[1], [0], [0], [1], [0, 0, 1, 1], [], []>} : vector<7x32xf32>, vector<32x32xf32>, vector<7x32xf32> -> vector<7x32xf32>
    %158 = arith.addf %156, %157 : vector<7x32xf32>
    %159 = vector.broadcast %22 : vector<1x32xf32> to vector<7x32xf32>
    %160 = arith.addf %158, %159 : vector<7x32xf32>
    %161 = arith.addf %114, %160 : vector<7x32xf32>
    %162 = tpu.iota {dimensions = array<i32: 0>} : vector<7x7xi32>
    %163 = tpu.iota {dimensions = array<i32: 1>} : vector<7x7xi32>
    %c1_i32_75 = arith.constant 1 : i32
    %164 = vector.broadcast %c1_i32_75 : i32 to vector<7x7xi32>
    %165 = arith.addi %162, %164 : vector<7x7xi32>
    %166 = arith.cmpi eq, %163, %165 : vector<7x7xi32>
    %167 = arith.extui %166 : vector<7x7xi1> to vector<7x7xi32>
    %168 = arith.sitofp %167 : vector<7x7xi32> to vector<7x7xf32>
    %c2_i32_76 = arith.constant 2 : i32
    %169 = vector.broadcast %c2_i32_76 : i32 to vector<7x7xi32>
    %170 = arith.addi %162, %169 : vector<7x7xi32>
    %171 = arith.cmpi eq, %163, %170 : vector<7x7xi32>
    %172 = arith.extui %171 : vector<7x7xi1> to vector<7x7xi32>
    %173 = arith.sitofp %172 : vector<7x7xi32> to vector<7x7xf32>
    %cst_77 = arith.constant dense<0.000000e+00> : vector<7x32xf32>
    %174 = tpu.matmul %168, %161, %cst_77 {dimension_numbers = #tpu.dot_dimension_numbers<[1], [0], [0], [1], [0, 0, 1, 1], [], []>} : vector<7x7xf32>, vector<7x32xf32>, vector<7x32xf32> -> vector<7x32xf32>
    %cst_78 = arith.constant dense<0.000000e+00> : vector<7x32xf32>
    %175 = tpu.matmul %173, %161, %cst_78 {dimension_numbers = #tpu.dot_dimension_numbers<[1], [0], [0], [1], [0, 0, 1, 1], [], []>} : vector<7x7xf32>, vector<7x32xf32>, vector<7x32xf32> -> vector<7x32xf32>
    %176 = arith.maximumf %161, %174 : vector<7x32xf32>
    %177 = arith.maximumf %176, %175 : vector<7x32xf32>
    %178 = tpu.iota {dimensions = array<i32: 0>} : vector<3x7xi32>
    %179 = tpu.iota {dimensions = array<i32: 1>} : vector<3x7xi32>
    %c2_i32_79 = arith.constant 2 : i32
    %180 = vector.broadcast %c2_i32_79 : i32 to vector<3x7xi32>
    %181 = arith.muli %180, %178 : vector<3x7xi32>
    %182 = arith.cmpi eq, %179, %181 : vector<3x7xi32>
    %183 = arith.extui %182 : vector<3x7xi1> to vector<3x7xi32>
    %184 = arith.sitofp %183 : vector<3x7xi32> to vector<3x7xf32>
    %cst_80 = arith.constant dense<0.000000e+00> : vector<3x32xf32>
    %185 = tpu.matmul %184, %177, %cst_80 {dimension_numbers = #tpu.dot_dimension_numbers<[1], [0], [0], [1], [0, 0, 1, 1], [], []>} : vector<3x7xf32>, vector<7x32xf32>, vector<3x32xf32> -> vector<3x32xf32>
    %cst_81 = arith.constant 0.000000e+00 : f32
    %186 = vector.broadcast %cst_81 : f32 to vector<3x32xf32>
    %187 = arith.maximumf %185, %186 : vector<3x32xf32>
    %188 = tpu.iota {dimensions = array<i32: 0>} : vector<3x3xi32>
    %189 = tpu.iota {dimensions = array<i32: 1>} : vector<3x3xi32>
    %c1_i32_82 = arith.constant 1 : i32
    %190 = vector.broadcast %c1_i32_82 : i32 to vector<3x3xi32>
    %191 = arith.subi %188, %190 : vector<3x3xi32>
    %192 = arith.cmpi eq, %189, %191 : vector<3x3xi32>
    %193 = arith.extui %192 : vector<3x3xi1> to vector<3x3xi32>
    %194 = arith.sitofp %193 : vector<3x3xi32> to vector<3x3xf32>
    %c1_i32_83 = arith.constant 1 : i32
    %195 = vector.broadcast %c1_i32_83 : i32 to vector<3x3xi32>
    %196 = arith.addi %188, %195 : vector<3x3xi32>
    %197 = arith.cmpi eq, %189, %196 : vector<3x3xi32>
    %198 = arith.extui %197 : vector<3x3xi1> to vector<3x3xi32>
    %199 = arith.sitofp %198 : vector<3x3xi32> to vector<3x3xf32>
    %cst_84 = arith.constant dense<0.000000e+00> : vector<3x32xf32>
    %200 = tpu.matmul %194, %187, %cst_84 {dimension_numbers = #tpu.dot_dimension_numbers<[1], [0], [0], [1], [0, 0, 1, 1], [], []>} : vector<3x3xf32>, vector<3x32xf32>, vector<3x32xf32> -> vector<3x32xf32>
    %cst_85 = arith.constant dense<0.000000e+00> : vector<3x32xf32>
    %201 = tpu.matmul %199, %187, %cst_85 {dimension_numbers = #tpu.dot_dimension_numbers<[1], [0], [0], [1], [0, 0, 1, 1], [], []>} : vector<3x3xf32>, vector<3x32xf32>, vector<3x32xf32> -> vector<3x32xf32>
    %cst_86 = arith.constant dense<0.000000e+00> : vector<3x32xf32>
    %202 = tpu.matmul %200, %9, %cst_86 {dimension_numbers = #tpu.dot_dimension_numbers<[1], [0], [0], [1], [0, 0, 1, 1], [], []>} : vector<3x32xf32>, vector<32x32xf32>, vector<3x32xf32> -> vector<3x32xf32>
    %cst_87 = arith.constant dense<0.000000e+00> : vector<3x32xf32>
    %203 = tpu.matmul %187, %11, %cst_87 {dimension_numbers = #tpu.dot_dimension_numbers<[1], [0], [0], [1], [0, 0, 1, 1], [], []>} : vector<3x32xf32>, vector<32x32xf32>, vector<3x32xf32> -> vector<3x32xf32>
    %204 = arith.addf %202, %203 : vector<3x32xf32>
    %cst_88 = arith.constant dense<0.000000e+00> : vector<3x32xf32>
    %205 = tpu.matmul %201, %13, %cst_88 {dimension_numbers = #tpu.dot_dimension_numbers<[1], [0], [0], [1], [0, 0, 1, 1], [], []>} : vector<3x32xf32>, vector<32x32xf32>, vector<3x32xf32> -> vector<3x32xf32>
    %206 = arith.addf %204, %205 : vector<3x32xf32>
    %207 = vector.broadcast %21 : vector<1x32xf32> to vector<3x32xf32>
    %208 = arith.addf %206, %207 : vector<3x32xf32>
    %cst_89 = arith.constant 0.000000e+00 : f32
    %209 = vector.broadcast %cst_89 : f32 to vector<3x32xf32>
    %210 = arith.maximumf %208, %209 : vector<3x32xf32>
    %211 = tpu.iota {dimensions = array<i32: 0>} : vector<3x3xi32>
    %212 = tpu.iota {dimensions = array<i32: 1>} : vector<3x3xi32>
    %c1_i32_90 = arith.constant 1 : i32
    %213 = vector.broadcast %c1_i32_90 : i32 to vector<3x3xi32>
    %214 = arith.subi %211, %213 : vector<3x3xi32>
    %215 = arith.cmpi eq, %212, %214 : vector<3x3xi32>
    %216 = arith.extui %215 : vector<3x3xi1> to vector<3x3xi32>
    %217 = arith.sitofp %216 : vector<3x3xi32> to vector<3x3xf32>
    %c1_i32_91 = arith.constant 1 : i32
    %218 = vector.broadcast %c1_i32_91 : i32 to vector<3x3xi32>
    %219 = arith.addi %211, %218 : vector<3x3xi32>
    %220 = arith.cmpi eq, %212, %219 : vector<3x3xi32>
    %221 = arith.extui %220 : vector<3x3xi1> to vector<3x3xi32>
    %222 = arith.sitofp %221 : vector<3x3xi32> to vector<3x3xf32>
    %cst_92 = arith.constant dense<0.000000e+00> : vector<3x32xf32>
    %223 = tpu.matmul %217, %210, %cst_92 {dimension_numbers = #tpu.dot_dimension_numbers<[1], [0], [0], [1], [0, 0, 1, 1], [], []>} : vector<3x3xf32>, vector<3x32xf32>, vector<3x32xf32> -> vector<3x32xf32>
    %cst_93 = arith.constant dense<0.000000e+00> : vector<3x32xf32>
    %224 = tpu.matmul %222, %210, %cst_93 {dimension_numbers = #tpu.dot_dimension_numbers<[1], [0], [0], [1], [0, 0, 1, 1], [], []>} : vector<3x3xf32>, vector<3x32xf32>, vector<3x32xf32> -> vector<3x32xf32>
    %cst_94 = arith.constant dense<0.000000e+00> : vector<3x32xf32>
    %225 = tpu.matmul %223, %15, %cst_94 {dimension_numbers = #tpu.dot_dimension_numbers<[1], [0], [0], [1], [0, 0, 1, 1], [], []>} : vector<3x32xf32>, vector<32x32xf32>, vector<3x32xf32> -> vector<3x32xf32>
    %cst_95 = arith.constant dense<0.000000e+00> : vector<3x32xf32>
    %226 = tpu.matmul %210, %17, %cst_95 {dimension_numbers = #tpu.dot_dimension_numbers<[1], [0], [0], [1], [0, 0, 1, 1], [], []>} : vector<3x32xf32>, vector<32x32xf32>, vector<3x32xf32> -> vector<3x32xf32>
    %227 = arith.addf %225, %226 : vector<3x32xf32>
    %cst_96 = arith.constant dense<0.000000e+00> : vector<3x32xf32>
    %228 = tpu.matmul %224, %19, %cst_96 {dimension_numbers = #tpu.dot_dimension_numbers<[1], [0], [0], [1], [0, 0, 1, 1], [], []>} : vector<3x32xf32>, vector<32x32xf32>, vector<3x32xf32> -> vector<3x32xf32>
    %229 = arith.addf %227, %228 : vector<3x32xf32>
    %230 = vector.broadcast %22 : vector<1x32xf32> to vector<3x32xf32>
    %231 = arith.addf %229, %230 : vector<3x32xf32>
    %232 = arith.addf %185, %231 : vector<3x32xf32>
    %cst_97 = arith.constant dense<0xFF800000> : vector<32xf32>
    %233 = vector.multi_reduction <maximumf>, %232, %cst_97 [0] : vector<3x32xf32> to vector<32xf32>
    %234 = vector.shape_cast %233 : vector<32xf32> to vector<1x32xf32>
    %c0_98 = arith.constant 0 : index
    %c0_99 = arith.constant 0 : index
    %235 = vector.load %arg8[%c0_98, %c0_99] : memref<32x128xf32, #tpu.memory_space<vmem>>, vector<32x128xf32>
    %cst_100 = arith.constant dense<0.000000e+00> : vector<1x128xf32>
    %236 = tpu.matmul %234, %235, %cst_100 {dimension_numbers = #tpu.dot_dimension_numbers<[1], [0], [0], [1], [0, 0, 1, 1], [], []>} : vector<1x32xf32>, vector<32x128xf32>, vector<1x128xf32> -> vector<1x128xf32>
    %c0_101 = arith.constant 0 : index
    %c0_102 = arith.constant 0 : index
    %237 = vector.load %arg9[%c0_101, %c0_102] : memref<1x128xf32, #tpu.memory_space<vmem>>, vector<1x128xf32>
    %238 = arith.addf %236, %237 : vector<1x128xf32>
    %c0_103 = arith.constant 0 : index
    %c0_104 = arith.constant 0 : index
    %c0_105 = arith.constant 0 : index
    %239 = vector.load %arg10[%c0_103, %c0_104, %c0_105] : memref<1x1x128xf32, #tpu.memory_space<vmem>>, vector<1x1x128xf32>
    %240 = vector.shape_cast %239 : vector<1x1x128xf32> to vector<1x128xf32>
    %241 = vector.shape_cast %238 : vector<1x128xf32> to vector<1x1x128xf32>
    tpu.vector_store %arg10[%c0_103, %c0_104, %c0_105], %241 {strides = array<i32>} : memref<1x1x128xf32, #tpu.memory_space<vmem>>, vector<1x1x128xf32>,
    return
  }
  func.func @transform_0(%arg0: i32) -> (i32, i32, i32) {
    %c0_i32 = arith.constant 0 : i32
    %c0_i32_0 = arith.constant 0 : i32
    %c0_i32_1 = arith.constant 0 : i32
    return %arg0, %c0_i32, %c0_i32_0 : i32, i32, i32
  }
  func.func @transform_1(%arg0: i32) -> (i32, i32, i32) {
    %c0_i32 = arith.constant 0 : i32
    %c0_i32_0 = arith.constant 0 : i32
    %c0_i32_1 = arith.constant 0 : i32
    %c0_i32_2 = arith.constant 0 : i32
    return %c0_i32, %c0_i32_0, %c0_i32_1 : i32, i32, i32
  }
  func.func @transform_2(%arg0: i32) -> (i32, i32) {
    %c0_i32 = arith.constant 0 : i32
    %c0_i32_0 = arith.constant 0 : i32
    %c0_i32_1 = arith.constant 0 : i32
    return %c0_i32, %c0_i32_0 : i32, i32
  }
  func.func @transform_3(%arg0: i32) -> (i32, i32, i32) {
    %c0_i32 = arith.constant 0 : i32
    %c0_i32_0 = arith.constant 0 : i32
    %c0_i32_1 = arith.constant 0 : i32
    %c0_i32_2 = arith.constant 0 : i32
    return %c0_i32, %c0_i32_0, %c0_i32_1 : i32, i32, i32
  }
  func.func @transform_4(%arg0: i32) -> (i32, i32) {
    %c0_i32 = arith.constant 0 : i32
    %c0_i32_0 = arith.constant 0 : i32
    %c0_i32_1 = arith.constant 0 : i32
    return %c0_i32, %c0_i32_0 : i32, i32
  }
  func.func @transform_5(%arg0: i32) -> (i32, i32, i32) {
    %c0_i32 = arith.constant 0 : i32
    %c0_i32_0 = arith.constant 0 : i32
    %c0_i32_1 = arith.constant 0 : i32
    %c0_i32_2 = arith.constant 0 : i32
    return %c0_i32, %c0_i32_0, %c0_i32_1 : i32, i32, i32
  }
  func.func @transform_6(%arg0: i32) -> (i32, i32) {
    %c0_i32 = arith.constant 0 : i32
    %c0_i32_0 = arith.constant 0 : i32
    %c0_i32_1 = arith.constant 0 : i32
    return %c0_i32, %c0_i32_0 : i32, i32
  }
  func.func @transform_7(%arg0: i32) -> (i32, i32) {
    %c0_i32 = arith.constant 0 : i32
    %c0_i32_0 = arith.constant 0 : i32
    %c0_i32_1 = arith.constant 0 : i32
    return %c0_i32, %c0_i32_0 : i32, i32
  }
  func.func @transform_8(%arg0: i32) -> (i32, i32) {
    %c0_i32 = arith.constant 0 : i32
    %c0_i32_0 = arith.constant 0 : i32
    %c0_i32_1 = arith.constant 0 : i32
    return %c0_i32, %c0_i32_0 : i32, i32
  }
  func.func @transform_9(%arg0: i32) -> (i32, i32, i32) {
    %c0_i32 = arith.constant 0 : i32
    %c0_i32_0 = arith.constant 0 : i32
    %c0_i32_1 = arith.constant 0 : i32
    return %arg0, %c0_i32, %c0_i32_0 : i32, i32, i32
  }
}

</mosaic_0001>

<bundles_post_ra>
// kernel: dpcnn_forward.1
= control target key start
LH: loop header
LB: loop body
LE: loop exit
PB: predicated region body
PF: predicated region fallthrough
CT: control target
= control target key end

     0   :  { %14 = vsyncpa [#allocation3], 0  ;;  %s2340_s0 = inlined_call_operand.vmem [shape: f32[2,16,32], index: 0, kind: input, shape index: {}]   ;;  %s2341_s1 = inlined_call_operand.vmem [shape: f32[3,32,32], index: 1, kind: input, shape index: {}]   ;;  %s2342_s2 = inlined_call_operand.vmem [shape: f32[1,32], index: 2, kind: input, shape index: {}]   ;;  %s2343_s3 = inlined_call_operand.vmem [shape: f32[3,32,32], index: 3, kind: input, shape index: {}]   ;;  %s2344_s4 = inlined_call_operand.vmem [shape: f32[1,32], index: 4, kind: input, shape index: {}]   ;;  %s2345_s5 = inlined_call_operand.vmem [shape: f32[3,32,32], index: 5, kind: input, shape index: {}]   ;;  %s2346_s6 = inlined_call_operand.vmem [shape: f32[1,32], index: 6, kind: input, shape index: {}]   ;;  %s2347_s7 = inlined_call_operand.vmem [shape: f32[32,128], index: 7, kind: input, shape index: {}]   ;;  %s2348_s8 = inlined_call_operand.vmem [shape: f32[1,128], index: 8, kind: input, shape index: {}]   ;;  %s2349_s9 = inlined_call_operand.hbm [shape: f32[2,1,128], index: 9, kind: output, shape index: {}]  }
   0x1   :  { %16 = vsyncpa [#allocation3 + $0x1], 0  ;;  %s1846_s30 = smov 0   ;;  %s1848_s10 = smov 0  }
   0x2   :  { %s1850_s11 = smov 0   ;;  %s1852_s12 = smov 0  }
   0x3 LB: > { %s1867_s13 = sadd.s32 4294967295, %s1793_s12   ;;  %s1576_s14 = sadd.s32 4294967294, %s1793_s12   ;;  %s1793_s12 = sphi %s1852_s12, %s2355_s12   ;;  %s1789_s11 = sphi %s1850_s11, %s2354_s11   ;;  %s1785_s10 = sphi %s1848_s10, %s2353_s10   ;;  %s1781_s30 = sphi %s1846_s30, %s2352_s30  }
   0x4   : > { %s1871_s15 = sadd.s32 1, %s1793_s12   ;;  %s223_s16 = sadd.s32 1, %s1789_s11 }
   0x5   : > { %s220_s17 = ssub.s32 %s1793_s12, %s1871_s15  ;;  %p233_p0 = scmp.ne.s32.totalorder %s1789_s11, %s1785_s10 }
   0x6   : > { %p221_p1 = scmp.eq.s32.totalorder %s220_s17, 0  ;;  %p234_p2 = scmp.eq.s32.totalorder %s1867_s13, 1 }
   0x7   : > { %p239_p3 = scmp.ne.s32.totalorder %s1785_s10, %s1781_s30  ;;  %p240_p4 = scmp.eq.s32.totalorder %s1576_s14, 1 }
   0x8   : > { %s1882_s18 = scalar_select %p221_p1, %s1789_s11, %s223_s16  }
   0x9   : > { %p1884_p5 = por %p234_p2, %p233_p0  ;;  %p1888_p6 = por %p240_p4, %p239_p3 }
   0xa   : > { %p1579_p7 = scmp.ge.s32.totalorder %s1793_s12, 1  ;;  %p290_p8 = scmp.lt.s32.totalorder %s1793_s12, 3 }
   0xc   : > { %p291_p9 = pnand %p1579_p7, %p290_p8 }
   0xd   : > { %p325_p10 = scmp.lt.s32.totalorder (!%p291_p9), %s1867_s13, 1  ;;  %s323_s28 = sand.u32 (!%p291_p9), 1, %s1785_s10  }
   0xe   : > { %294 = sbr.rel (%p291_p9) target bundleno = 2628 (0xa44), region = 56  ;;  %s1751_s14 = scalar_lea.hbm (!%p291_p9), %s2349_s9, 2 }
  0x13   : > { %v377_v0 = vlaneseq  ;;  %v1585_v1 = vld [vmem:[%s2341_s1 + $0x38] sm:$0xff]  ;;  %v1584_v3 = vld [vmem:[%s2341_s1 + $0x30] sm:$0xff]  ;;  %v1583_v5 = vld [vmem:[%s2341_s1 + $0x28] sm:$0xff]  ;;  %s326_s16 = scalar_select %p325_p10, %s1867_s13, 1  ;;  %v1795_v14 = vmov 0.0   ;;  %vm398_vm2 = vcmask 130048  }
  0x14   : > { %v335_v2 = vld [vmem:[%s2341_s1 + $0x18] sm:$0xff]  ;;  %476 = vmatpush.msra.mxu2 %v1585_v1  ;;  %v334_v4 = vld [vmem:[%s2341_s1 + $0x10] sm:$0xff]  ;;  %v333_v8 = vld [vmem:[%s2341_s1 + $0x8] sm:$0xff]  ;;  %vm457_vm5 = vcmask 261120   ;;  %vm933_vm9 = vcmask 1046528   ;;  %vm930_vm10 = vcmask 56320  }
  0x15   : > { %505 = vmatpush.msra.mxu3 %v335_v2  ;;  %v1911_v6 = vshrl.u32 %v377_v0, 7  ;;  %v1913_v7 = vand.u32 127, %v377_v0  ;;  %s1687_s22 = sshll.u32 %s326_s16, 4  ;;  %v1582_v21 = vld [vmem:[%s2341_s1 + $0x20] sm:$0xff]  ;;  %v1589_v23 = vld [vmem:[%s2341_s1 + $0x58] sm:$0xff]  ;;  %v1588_v24 = vld [vmem:[%s2341_s1 + $0x50] sm:$0xff]  ;;  %s1517_s16 = scalar_lea.hbm %s2349_s9, %s1867_s13 }
  0x16   : > { %477 = vmatpush.msra.mxu2 %v1584_v3  ;;  %s329_s25 = scalar_lea.vmem %s2340_s0, %s1687_s22  ;;  %v332_v22 = vld [vmem:[%s2341_s1] sm:$0xff]  ;;  %v1587_v25 = vld [vmem:[%s2341_s1 + $0x48] sm:$0xff]  ;;  %v1979_v31 = vld [vmem:[%s2343_s3 + $0x38] sm:$0xff]  ;;  %vm1240_vm11 = vcmask 1042432   ;;  %vm1237_vm12 = vcmask 23552   ;;  %vm1471_vm13 = vcmask 256000  }
  0x17   : > { %506 = vmatpush.msra.mxu3 %v334_v4  ;;  %v1606_v9 = vadd.s32 4294967295, %v1911_v6  ;;  %v1920_v10 = vadd.s32 8, %v1911_v6  ;;  %v390_v11 = vadd.s32 1, %v1911_v6  ;;  %v331_v12 = vld [vmem:[%s329_s25 + $0x8] sm:$0xff]  ;;  %v330_v13 = vld [vmem:[%s329_s25] sm:$0xff]  ;;  %v1985_v32 = vld [vmem:[%s2343_s3 + $0x30] sm:$0xff] }
  0x18   : > { %478 = vmatpush.msra.mxu2 %v1583_v5  ;;  %419 = vmatpush.msra.mxu0 %v331_v12  ;;  %v1586_v26 = vld [vmem:[%s2341_s1 + $0x40] sm:$0xff]  ;;  %v1991_v33 = vld [vmem:[%s2343_s3 + $0x28] sm:$0xff]  ;;  %v2003_v36 = vld [vmem:[%s2343_s3 + $0x18] sm:$0xff]  ;;  %s324_s22 = scalar_lea.vmem [#allocation2], %s323_s28  ;;  %s1521_s24 = sshll.u32 %s1517_s16, 4  ;;  %s1522_s24 = int_to_ptr.hbm [resolvable:$true] %s1521_s24 }
  0x19   : > { %507 = vmatpush.msra.mxu3 %v333_v8  ;;  %vm384_vm0 = vcmp.eq.s32.totalorder %v1913_v7, %v1606_v9  ;;  %vm392_vm1 = vcmp.eq.s32.totalorder %v1913_v7, %v390_v11  ;;  %448 = vmatpush.msra.mxu1 %v331_v12  ;;  %v1607_v17 = vadd.s32 4294967295, %v1920_v10  ;;  %v391_v18 = vadd.s32 1, %v1920_v10  ;;  %v1997_v34 = vld [vmem:[%s2343_s3 + $0x20] sm:$0xff]  ;;  %v2028_v51 = vld [vmem:[%s2343_s3 + $0x10] sm:$0xff]  ;;  %v2033_v52 = vld [vmem:[%s2343_s3 + $0x8] sm:$0xff]  ;;  %s1519_s23 = sshll.u32 %s324_s22, 4  ;;  %s1520_s23 = int_to_ptr.vmem [resolvable:$true] %s1519_s23 }
  0x1a   : > { %v1929_v15 = vsel %vm384_vm0, 1.0, %v1795_v14  ;;  %v1932_v16 = vsel %vm392_vm1, 1.0, %v1795_v14  ;;  %420 = vmatpush.msra.mxu0 %v330_v13  ;;  %479 = vmatpush.msra.mxu2 %v1582_v21  ;;  %v1728_v40 = vld [vmem:[%s2342_s2] ss:$0 sm:$0xff]  ;;  %v2045_v54 = vld [vmem:[%s2343_s3 + $0x58] sm:$0xff]  ;;  %v2052_v55 = vld [vmem:[%s2343_s3 + $0x50] sm:$0xff] }
  0x1b   : > { %449 = vmatpush.msra.mxu1 %v330_v13  ;;  %1612 = vmatmul.msk.f32.vlgmr.msra.gmra.mxu0 %vm398_vm2, %v1929_v15  ;;  %vm385_vm3 = vcmp.eq.s32.totalorder %v1913_v7, %v1607_v17  ;;  %vm393_vm4 = vcmp.eq.s32.totalorder %v1913_v7, %v391_v18  ;;  %v2040_v53 = vld [vmem:[%s2343_s3] sm:$0xff]  ;;  %v2058_v56 = vld [vmem:[%s2343_s3 + $0x48] sm:$0xff]  ;;  %v2074_v62 = vld [vmem:[%s2345_s5 + $0x38] sm:$0xff]  ;;  %s1509_s25 = scalar_lea.sflag [#allocation3], %s323_s28  ;;  %s1745_s26 = sshra.s32 %s1522_s24, 4  ;;  %s1746_s26 = int_to_ptr.hbm [resolvable:$true] %s1745_s26 }
  0x1c   : > { %1614 = vmatmul.msk.f32.vlgmr.msra.gmra.mxu1 %vm398_vm2, %v1932_v16  ;;  %v1943_v19 = vsel %vm385_vm3, 1.0, %v1795_v14  ;;  %v1946_v20 = vsel %vm393_vm4, 1.0, %v1795_v14  ;;  %508 = vmatpush.msra.mxu3 %v332_v22  ;;  %v2064_v57 = vld [vmem:[%s2343_s3 + $0x40] sm:$0xff]  ;;  %v2080_v63 = vld [vmem:[%s2345_s5 + $0x30] sm:$0xff]  ;;  %v2086_v0 = vld [vmem:[%s2345_s5 + $0x28] sm:$0xff]  ;;  %s1747_s27 = scalar_lea.hbm %s1746_s26, 1  ;;  %p1752_p0 = scmp.lt.s32.totalorder %s1746_s26, %s2349_s9 }
  0x1d   : > { %1616 = vmatmul.msk.f32.vlgmr.msra.gmra.mxu2 %vm457_vm5, %v330_v13  ;;  %534 = vmatpush.msrb.mxu0 %v1589_v23  ;;  %v2092_v1 = vld [vmem:[%s2345_s5 + $0x20] sm:$0xff]  ;;  %p1748_p11 = scmp.ne.s32.totalorder %s1746_s26, %s1747_s27  ;;  %p1753_p1 = scmp.lt.s32.totalorder %s1751_s14, %s1747_s27 }
  0x1e   : > { %618 = vmatpush.msrb.mxu3 %v1979_v31  ;;  %v2098_v5 = vld [vmem:[%s2344_s4] ss:$0 sm:$0xff] }
  0x1f   : > { %535 = vmatpush.msrb.mxu0 %v1588_v24  ;;  %p1749_p12 = pnand %p1748_p11, %p1884_p5  ;;  %p1754_p2 = por %p1753_p1, %p1752_p0 }
  0x20   : > { %619 = vmatpush.msrb.mxu3 %v1985_v32 }
  0x21   : > { %536 = vmatpush.msrb.mxu0 %v1587_v25  ;;  %v2115_v25 = vld [vmem:[%s2345_s5 + $0x18] sm:$0xff]  ;;  %p1750_p13 = pneg %p1749_p12 }
  0x22   : > { %620 = vmatpush.msrb.mxu3 %v1991_v33 }
  0x23   : > { %1613 = vmatmul.msk.f32.gmra.mxu0 %vm398_vm2, %v1943_v19  ;;  %p1755_p3 = pnand %p1754_p2, %p1750_p13 }
  0x24   : > { %1615 = vmatmul.msk.f32.gmra.mxu1 %vm398_vm2, %v1946_v20  ;;  %537 = vmatpush.msrb.mxu0 %v1586_v26  ;;  %v2120_v26 = vld [vmem:[%s2345_s5 + $0x58] sm:$0xff] }
  0x25   : > { %1617 = vmatmul.msk.f32.gmra.mxu2 %vm457_vm5, %v331_v12  ;;  %621 = vmatpush.msrb.mxu3 %v1997_v34 }
  0x26   : > { %647 = vmatpush.msra.mxu0 %v2003_v36 }
  0x28   : > { %648 = vmatpush.msra.mxu0 %v2028_v51 }
  0x2a   : > { %649 = vmatpush.msra.mxu0 %v2033_v52 }
  0x2c   : > { %650 = vmatpush.msra.mxu0 %v2040_v53 }
  0x98   : > { %v422_v27 = vpop.f32.mrf.mxu0 }
  0x99   : > { %v451_v28 = vpop.f32.mrf.mxu1  ;;  %1618 = vmatmul.msk.f32.vlgmr.msra.gmra.mxu3 %vm457_vm5, %v422_v27  ;;  %v2125_v27 = vld [vmem:[%s2345_s5 + $0x10] sm:$0xff] }
  0x9a   : > { %1620 = vmatmul.msk.f32.vlgmr.msrb.gmra.mxu0 %vm457_vm5, %v451_v28  ;;  %v2137_v28 = vld [vmem:[%s2345_s5 + $0x8] sm:$0xff] }
  0x9b   : > { %760 = vmatpush.msrb.mxu0 %v2074_v62 }
  0x9d   : > { %761 = vmatpush.msrb.mxu0 %v2080_v63 }
  0x9f   : > { %762 = vmatpush.msrb.mxu0 %v2086_v0 }
  0xa0   : > { %v425_v29 = vpop.f32.mrf.mxu0  ;;  %v481_v35 = vpop.f32.mrf.mxu2 }
  0xa1   : > { %v454_v30 = vpop.f32.mrf.mxu1  ;;  %1619 = vmatmul.msk.f32.gmra.mxu3 %vm457_vm5, %v425_v29  ;;  %763 = vmatpush.msrb.mxu0 %v2092_v1  ;;  %v2142_v29 = vld [vmem:[%s2345_s5 + $0x48] sm:$0xff] }
  0xa2   : > { %1621 = vmatmul.msk.f32.gmra.mxu0 %vm457_vm5, %v454_v30  ;;  %v2151_v30 = vld [vmem:[%s2345_s5] sm:$0xff] }
  0xa8   : > { %v484_v43 = vpop.f32.mrf.mxu2 }
 0x117   : > { %v539_v37 = vpop.f32.mrf.mxu0 }
 0x11c   : > { %v510_v38 = vpop.f32.mrf.mxu3 }
 0x11d   : > { %v511_v39 = vadd.f32 %v510_v38, %v481_v35  ;;  %v2156_v35 = vld [vmem:[%s2345_s5 + $0x40] sm:$0xff] }
 0x11f   : > { %v545_v41 = vadd.f32 %v539_v37, %v511_v39  ;;  %v542_v46 = vpop.f32.mrf.mxu0 }
 0x121   : > { %v2009_v42 = vadd.f32 %v1728_v40, %v545_v41 }
 0x123   : > { %v552_v44 = vmax.f32 %v2009_v42, 0.0 }
 0x124   : > { %v513_v45 = vpop.f32.mrf.mxu3 }
 0x125   : > { %v514_v47 = vadd.f32 %v513_v45, %v484_v43  ;;  %1626 = vmatmul.msk.f32.vlgmr.msrb.gmra.mxu3 %vm457_vm5, %v552_v44 }
 0x127   : > { %v546_v48 = vadd.f32 %v542_v46, %v514_v47 }
 0x129   : > { %v2013_v49 = vadd.f32 %v1728_v40, %v546_v48 }
 0x12b   : > { %v553_v50 = vmax.f32 %v2013_v49, 0.0 }
 0x12d   : > { %568 = vmatpush.msrb.mxu1 %v553_v50  ;;  %591 = vmatpush.msrb.mxu2 %v553_v50 }
 0x12e   : > { %1627 = vmatmul.msk.f32.gmra.mxu3 %vm457_vm5, %v553_v50  ;;  %v2167_v50 = vld [vmem:[%s2346_s6] ss:$0 sm:$0xff] }
 0x12f   : > { %569 = vmatpush.msrb.mxu1 %v552_v44  ;;  %592 = vmatpush.msrb.mxu2 %v552_v44 }
 0x130   : > { %1622 = vmatmul.msk.f32.vlgmr.msrb.gmra.mxu1 %vm398_vm2, %v1929_v15  ;;  %1624 = vmatmul.msk.f32.vlgmr.msrb.gmra.mxu2 %vm398_vm2, %v1932_v16 }
 0x131   : > { %676 = vmatpush.msra.mxu1 %v2045_v54 }
 0x133   : > { %677 = vmatpush.msra.mxu1 %v2052_v55 }
 0x135   : > { %678 = vmatpush.msra.mxu1 %v2058_v56 }
 0x137   : > { %679 = vmatpush.msra.mxu1 %v2064_v57 }
 0x138   : > { %1623 = vmatmul.msk.f32.gmra.mxu1 %vm398_vm2, %v1943_v19  ;;  %1625 = vmatmul.msk.f32.gmra.mxu2 %vm398_vm2, %v1946_v20 }
 0x139   : > { %789 = vmatpush.msrb.mxu1 %v2115_v25 }
 0x13b   : > { %790 = vmatpush.msrb.mxu1 %v2125_v27 }
 0x13d   : > { %791 = vmatpush.msrb.mxu1 %v2137_v28 }
 0x13f   : > { %792 = vmatpush.msrb.mxu1 %v2151_v30 }
 0x1a8   : > { %v623_v3 = vpop.f32.mrf.mxu3 }
 0x1ad   : > { %v571_v58 = vpop.f32.mrf.mxu1 }
 0x1ae   : > { %1628 = vmatmul.msk.f32.vlgmr.msra.gmra.mxu0 %vm457_vm5, %v571_v58 }
 0x1b1   : > { %v626_v17 = vpop.f32.mrf.mxu3 }
 0x1b3   : > { %v594_v59 = vpop.f32.mrf.mxu2 }
 0x1b4   : > { %1630 = vmatmul.msk.f32.vlgmr.msra.gmra.mxu1 %vm457_vm5, %v594_v59 }
 0x1b5   : > { %v574_v60 = vpop.f32.mrf.mxu1 }
 0x1b6   : > { %1629 = vmatmul.msk.f32.gmra.mxu0 %vm457_vm5, %v574_v60  ;;  %v838_v60 = vadd.s32 2, %v1911_v6 }
 0x1b8   : > { %vm840_vm6 = vcmp.eq.s32.totalorder %v1913_v7, %v838_v60 }
 0x1bb   : > { %v597_v61 = vpop.f32.mrf.mxu2 }
 0x1bc   : > { %1631 = vmatmul.msk.f32.gmra.mxu1 %vm457_vm5, %v597_v61 }
 0x22b   : > { %v652_v2 = vpop.f32.mrf.mxu0 }
 0x22c   : > { %v653_v4 = vadd.f32 %v652_v2, %v623_v3 }
 0x231   : > { %v681_v8 = vpop.f32.mrf.mxu1 }
 0x232   : > { %v687_v9 = vadd.f32 %v681_v8, %v653_v4 }
 0x233   : > { %v655_v12 = vpop.f32.mrf.mxu0 }
 0x234   : > { %v692_v11 = vadd.f32 %v2098_v5, %v687_v9  ;;  %v656_v18 = vadd.f32 %v655_v12, %v626_v17  ;;  %v2176_v9 = vsel %vm840_vm6, 1.0, %v1795_v14 }
 0x236   : > { %v694_v13 = vmax.f32 %v692_v11, 0.0  ;;  %v839_v11 = vadd.s32 2, %v1920_v10  ;;  %v902_v10 = vmul.u32 2, %v1911_v6 }
 0x238   : > { %1636 = vmatmul.msk.f32.vlgmr.msrb.gmra.mxu0 %vm457_vm5, %v694_v13  ;;  %vm841_vm7 = vcmp.eq.s32.totalorder %v1913_v7, %v839_v11  ;;  %vm903_vm8 = vcmp.eq.s32.totalorder %v1913_v7, %v902_v10 }
 0x239   : > { %v684_v21 = vpop.f32.mrf.mxu1 }
 0x23a   : > { %v688_v22 = vadd.f32 %v684_v21, %v656_v18 }
 0x23c   : > { %v693_v23 = vadd.f32 %v2098_v5, %v688_v22 }
 0x23e   : > { %v695_v24 = vmax.f32 %v693_v23, 0.0 }
 0x240   : > { %710 = vmatpush.msra.mxu2 %v695_v24  ;;  %733 = vmatpush.msra.mxu3 %v695_v24 }
 0x241   : > { %1637 = vmatmul.msk.f32.gmra.mxu0 %vm457_vm5, %v695_v24  ;;  %v2191_v24 = vsel %vm903_vm8, 1.0, %v1795_v14 }
 0x242   : > { %711 = vmatpush.msra.mxu2 %v694_v13  ;;  %734 = vmatpush.msra.mxu3 %v694_v13 }
 0x243   : > { %1632 = vmatmul.msk.f32.vlgmr.msra.gmra.mxu2 %vm398_vm2, %v1929_v15  ;;  %1634 = vmatmul.msk.f32.vlgmr.msra.gmra.mxu3 %vm398_vm2, %v1932_v16 }
 0x244   : > { %818 = vmatpush.msrb.mxu2 %v2120_v26 }
 0x24b   : > { %1633 = vmatmul.msk.f32.gmra.mxu2 %vm398_vm2, %v1943_v19  ;;  %1635 = vmatmul.msk.f32.gmra.mxu3 %vm398_vm2, %v1946_v20  ;;  %v2132_v19 = vld [vmem:[%s2345_s5 + $0x50] sm:$0xff] }
 0x24c   : > { %819 = vmatpush.msrb.mxu2 %v2132_v19 }
 0x24e   : > { %820 = vmatpush.msrb.mxu2 %v2142_v29 }
 0x250   : > { %821 = vmatpush.msrb.mxu2 %v2156_v35 }
 0x2b5   : > { %v765_v43 = vpop.f32.mrf.mxu0 }
 0x2be   : > { %v768_v47 = vpop.f32.mrf.mxu0 }
 0x2c6   : > { %v713_v37 = vpop.f32.mrf.mxu2  ;;  %v736_v38 = vpop.f32.mrf.mxu3 }
 0x2c7   : > { %1638 = vmatmul.msk.f32.vlgmr.msrb.gmra.mxu1 %vm457_vm5, %v713_v37  ;;  %1640 = vmatmul.msk.f32.vlgmr.msrb.gmra.mxu2 %vm457_vm5, %v736_v38 }
 0x2ce   : > { %v716_v39 = vpop.f32.mrf.mxu2  ;;  %v739_v40 = vpop.f32.mrf.mxu3 }
 0x2cf   : > { %1639 = vmatmul.msk.f32.gmra.mxu1 %vm457_vm5, %v716_v39  ;;  %1641 = vmatmul.msk.f32.gmra.mxu2 %vm457_vm5, %v739_v40 }
 0x344   : > { %v794_v41 = vpop.f32.mrf.mxu1 }
 0x345   : > { %v795_v46 = vadd.f32 %v794_v41, %v765_v43 }
 0x34a   : > { %v823_v44 = vpop.f32.mrf.mxu2 }
 0x34b   : > { %v829_v48 = vadd.f32 %v823_v44, %v795_v46 }
 0x34c   : > { %v797_v45 = vpop.f32.mrf.mxu1 }
 0x34d   : > { %v798_v58 = vadd.f32 %v797_v45, %v768_v47  ;;  %v834_v2 = vadd.f32 %v2167_v50, %v829_v48 }
 0x34f   : > { %v836_v8 = vadd.f32 %v834_v2, %v2009_v42 }
 0x352   : > { %v826_v59 = vpop.f32.mrf.mxu2 }
 0x353   : > { %v830_v61 = vadd.f32 %v826_v59, %v798_v58 }
 0x355   : > { %v835_v3 = vadd.f32 %v2167_v50, %v830_v61 }
 0x357   : > { %v837_v4 = vadd.f32 %v835_v3, %v2013_v49  ;;  %v1643_v49 = vsel %vm841_vm7, 1.0, %v1795_v14 }
 0x359   : > { %860 = vmatpush.msrb.mxu3 %v837_v4  ;;  %889 = vmatpush.msra.mxu0 %v837_v4 }
 0x35b   : > { %861 = vmatpush.msrb.mxu3 %v836_v8  ;;  %890 = vmatpush.msra.mxu0 %v836_v8 }
 0x35c   : > { %1644 = vmatmul.msk.f32.vlgmr.msrb.gmra.mxu3 %vm398_vm2, %v1932_v16  ;;  %1646 = vmatmul.msk.f32.vlgmr.msra.gmra.mxu0 %vm398_vm2, %v2176_v9 }
 0x364   : > { %1645 = vmatmul.msk.f32.gmra.mxu3 %vm398_vm2, %v1946_v20  ;;  %1647 = vmatmul.msk.f32.gmra.mxu0 %vm398_vm2, %v1643_v49 }
 0x3d9   : > { %v892_v42 = vpop.f32.mrf.mxu0 }
 0x3df   : > { %v863_v12 = vpop.f32.mrf.mxu3 }
 0x3e0   : > { %v898_v18 = vmax.f32 %v836_v8, %v863_v12 }
 0x3e1   : > { %v895_v17 = vpop.f32.mrf.mxu0 }
 0x3e2   : > { %v900_v23 = vmax.f32 %v898_v18, %v892_v42 }
 0x3e7   : > { %v866_v13 = vpop.f32.mrf.mxu3 }
 0x3e8   : > { %v899_v21 = vmax.f32 %v837_v4, %v866_v13 }
 0x3ea   : > { %v901_v22 = vmax.f32 %v899_v21, %v895_v17 }
 0x3ec   : > { %923 = vmatpush.msra.mxu1 %v901_v22 }
 0x3ee   : > { %924 = vmatpush.msra.mxu1 %v900_v23 }
 0x3ef   : > { %1649 = vmatmul.msk.f32.vlgmr.msra.gmra.mxu1 %vm398_vm2, %v2191_v24 }
 0x3f0   : > { %993 = vmatpush.msrb.mxu1 %v1979_v31 }
 0x3f2   : > { %994 = vmatpush.msrb.mxu1 %v1985_v32 }
 0x3f4   : > { %995 = vmatpush.msrb.mxu1 %v1991_v33 }
 0x3f6   : > { %996 = vmatpush.msrb.mxu1 %v1997_v34 }
 0x46c   : > { %v926_v6 = vpop.f32.mrf.mxu1 }
 0x46d   : > { %v929_v7 = vmax.f32 %v926_v6, 0.0 }
 0x46f   : > { %1650 = vmatpush.msk.msra.mxu2 %vm933_vm9, %v929_v7  ;;  %1652 = vmatpush.msk.msra.mxu3 %vm933_vm9, %v929_v7 }
 0x470   : > { %1654 = vmatmul.msk.f32.vlgmr.msrb.gmra.mxu1 %vm457_vm5, %v929_v7  ;;  %1651 = vmatmul.msk.f32.vlgmr.msra.gmra.mxu2 %vm930_vm10, %v1929_v15 }
 0x471   : > { %1653 = vmatmul.msk.f32.vlgmr.msra.gmra.mxu3 %vm930_vm10, %v1932_v16  ;;  %1016 = vmatpush.msrb.mxu2 %v2003_v36 }
 0x472   : > { %1039 = vmatpush.msrb.mxu3 %v2045_v54 }
 0x473   : > { %1017 = vmatpush.msrb.mxu2 %v2028_v51 }
 0x474   : > { %1040 = vmatpush.msrb.mxu3 %v2052_v55 }
 0x475   : > { %1018 = vmatpush.msrb.mxu2 %v2033_v52 }
 0x476   : > { %1041 = vmatpush.msrb.mxu3 %v2058_v56 }
 0x477   : > { %1019 = vmatpush.msrb.mxu2 %v2040_v53 }
 0x478   : > { %1042 = vmatpush.msrb.mxu3 %v2064_v57 }
 0x479   : > { %1107 = vmatpush.msra.mxu2 %v2074_v62 }
 0x47a   : > { %1130 = vmatpush.msra.mxu3 %v2115_v25 }
 0x47b   : > { %1108 = vmatpush.msra.mxu2 %v2080_v63 }
 0x47c   : > { %1131 = vmatpush.msra.mxu3 %v2125_v27 }
 0x47d   : > { %1109 = vmatpush.msra.mxu2 %v2086_v0 }
 0x47e   : > { %1132 = vmatpush.msra.mxu3 %v2137_v28 }
 0x47f   : > { %1110 = vmatpush.msra.mxu2 %v2092_v1 }
 0x480   : > { %1133 = vmatpush.msra.mxu3 %v2151_v30 }
 0x4ed   : > { %v998_v37 = vpop.f32.mrf.mxu1 }
 0x4f3   : > { %v954_v14 = vpop.f32.mrf.mxu2 }
 0x4f4   : > { %1655 = vmatmul.msk.f32.vlgmr.msrb.gmra.mxu2 %vm457_vm5, %v954_v14  ;;  %v976_v20 = vpop.f32.mrf.mxu3 }
 0x4f5   : > { %1656 = vmatmul.msk.f32.vlgmr.msrb.gmra.mxu3 %vm457_vm5, %v976_v20 }
 0x577   : > { %v1021_v38 = vpop.f32.mrf.mxu2 }
 0x578   : > { %v1022_v39 = vadd.f32 %v1021_v38, %v998_v37  ;;  %v1044_v40 = vpop.f32.mrf.mxu3 }
 0x57a   : > { %v1047_v41 = vadd.f32 %v1044_v40, %v1022_v39 }
 0x57c   : > { %v1048_v43 = vadd.f32 %v2098_v5, %v1047_v41 }
 0x57e   : > { %v1049_v44 = vmax.f32 %v1048_v43, 0.0 }
 0x580   : > { %1657 = vmatpush.msk.msrb.mxu0 %vm933_vm9, %v1049_v44  ;;  %1659 = vmatpush.msk.msra.mxu1 %vm933_vm9, %v1049_v44 }
 0x581   : > { %1661 = vmatmul.msk.f32.vlgmr.msra.gmra.mxu2 %vm457_vm5, %v1049_v44  ;;  %1658 = vmatmul.msk.f32.vlgmr.msrb.gmra.mxu0 %vm930_vm10, %v1929_v15 }
 0x582   : > { %1660 = vmatmul.msk.f32.vlgmr.msra.gmra.mxu1 %vm930_vm10, %v1932_v16  ;;  %1153 = vmatpush.msra.mxu0 %v2120_v26 }
 0x584   : > { %1154 = vmatpush.msra.mxu0 %v2132_v19 }
 0x586   : > { %1155 = vmatpush.msra.mxu0 %v2142_v29 }
 0x588   : > { %1156 = vmatpush.msra.mxu0 %v2156_v35 }
 0x5fe   : > { %v1070_v45 = vpop.f32.mrf.mxu0 }
 0x5ff   : > { %1662 = vmatmul.msk.f32.vlgmr.msra.gmra.mxu3 %vm457_vm5, %v1070_v45  ;;  %v1090_v46 = vpop.f32.mrf.mxu1 }
 0x600   : > { %1663 = vmatmul.msk.f32.vlgmr.msra.gmra.mxu0 %vm457_vm5, %v1090_v46 }
 0x604   : > { %v1112_v47 = vpop.f32.mrf.mxu2 }
 0x67d   : > { %v1158_v58 = vpop.f32.mrf.mxu0 }
 0x682   : > { %v1135_v48 = vpop.f32.mrf.mxu3 }
 0x683   : > { %v1136_v59 = vadd.f32 %v1135_v48, %v1112_v47 }
 0x685   : > { %v1161_v60 = vadd.f32 %v1158_v58, %v1136_v59 }
 0x687   : > { %v1162_v61 = vadd.f32 %v2167_v50, %v1161_v60 }
 0x689   : > { %v1163_v2 = vadd.f32 %v1162_v61, %v926_v6 }
 0x68b   : > { %1664 = vmatpush.msk.msrb.mxu1 %vm933_vm9, %v1163_v2  ;;  %1666 = vmatpush.msk.msrb.mxu2 %vm933_vm9, %v1163_v2 }
 0x68c   : > { %1665 = vmatmul.msk.f32.vlgmr.msrb.gmra.mxu1 %vm930_vm10, %v1932_v16  ;;  %1667 = vmatmul.msk.f32.vlgmr.msrb.gmra.mxu2 %vm930_vm10, %v2176_v9 }
 0x68d   : > { %1300 = vmatpush.msra.mxu2 %v1979_v31 }
 0x68f   : > { %1301 = vmatpush.msra.mxu2 %v1985_v32 }
 0x691   : > { %1302 = vmatpush.msra.mxu2 %v1991_v33 }
 0x693   : > { %1303 = vmatpush.msra.mxu2 %v1997_v34 }
 0x709   : > { %v1184_v3 = vpop.f32.mrf.mxu1 }
 0x70a   : > { %v1209_v4 = vmax.f32 %v1163_v2, %v1184_v3 }
 0x70f   : > { %v1206_v8 = vpop.f32.mrf.mxu2 }
 0x710   : > { %v1210_v11 = vmax.f32 %v1209_v4, %v1206_v8 }
 0x712   : > { %1668 = vmatpush.msk.msrb.mxu3 %vm933_vm9, %v1210_v11 }
 0x713   : > { %1669 = vmatmul.msk.f32.vlgmr.msrb.gmra.mxu3 %vm930_vm10, %v2191_v24 }
 0x714   : > { %1323 = vmatpush.msra.mxu3 %v2003_v36 }
 0x716   : > { %1324 = vmatpush.msra.mxu3 %v2028_v51 }
 0x718   : > { %1325 = vmatpush.msra.mxu3 %v2033_v52 }
 0x71a   : > { %1326 = vmatpush.msra.mxu3 %v2040_v53 }
 0x71c   : > { %1414 = vmatpush.msrb.mxu3 %v2074_v62 }
 0x71e   : > { %1415 = vmatpush.msrb.mxu3 %v2080_v63  ;;  %v1480_v63 = vld [vmem:[%s2347_s7 + $0x8] sm:$0xff] }
 0x720   : > { %1416 = vmatpush.msrb.mxu3 %v2086_v0  ;;  %v1479_v0 = vld [vmem:[%s2347_s7] sm:$0xff] }
 0x722   : > { %1417 = vmatpush.msrb.mxu3 %v2092_v1 }
 0x796   : > { %v1233_v31 = vpop.f32.mrf.mxu3 }
 0x797   : > { %v1236_v32 = vmax.f32 %v1233_v31, 0.0 }
 0x799   : > { %1670 = vmatpush.msk.msrb.mxu0 %vm1240_vm11, %v1236_v32  ;;  %1672 = vmatpush.msk.msra.mxu1 %vm1240_vm11, %v1236_v32 }
 0x79a   : > { %1671 = vmatmul.msk.f32.vlgmr.msrb.gmra.mxu0 %vm1237_vm12, %v1929_v15  ;;  %1674 = vmatmul.msk.f32.vlgmr.msra.gmra.mxu2 %vm457_vm5, %v1236_v32 }
 0x79b   : > { %1673 = vmatmul.msk.f32.vlgmr.msra.gmra.mxu1 %vm1237_vm12, %v1932_v16  ;;  %1346 = vmatpush.msra.mxu0 %v2045_v54 }
 0x79d   : > { %1347 = vmatpush.msra.mxu0 %v2052_v55 }
 0x79f   : > { %1348 = vmatpush.msra.mxu0 %v2058_v56 }
 0x7a1   : > { %1349 = vmatpush.msra.mxu0 %v2064_v57 }
 0x7a3   : > { %1437 = vmatpush.msrb.mxu0 %v2115_v25 }
 0x7a5   : > { %1438 = vmatpush.msrb.mxu0 %v2125_v27 }
 0x7a7   : > { %1439 = vmatpush.msrb.mxu0 %v2137_v28 }
 0x7a9   : > { %1440 = vmatpush.msrb.mxu0 %v2151_v30 }
 0x817   : > { %v1261_v33 = vpop.f32.mrf.mxu0 }
 0x818   : > { %1675 = vmatmul.msk.f32.vlgmr.msra.gmra.mxu3 %vm457_vm5, %v1261_v33  ;;  %v1283_v34 = vpop.f32.mrf.mxu1 }
 0x819   : > { %1676 = vmatmul.msk.f32.vlgmr.msra.gmra.mxu0 %vm457_vm5, %v1283_v34 }
 0x81d   : > { %v1305_v36 = vpop.f32.mrf.mxu2 }
 0x896   : > { %v1351_v52 = vpop.f32.mrf.mxu0 }
 0x89b   : > { %v1328_v51 = vpop.f32.mrf.mxu3 }
 0x89c   : > { %v1329_v53 = vadd.f32 %v1328_v51, %v1305_v36 }
 0x89e   : > { %v1354_v54 = vadd.f32 %v1351_v52, %v1329_v53 }
 0x8a0   : > { %v1355_v55 = vadd.f32 %v2098_v5, %v1354_v54 }
 0x8a2   : > { %v1356_v56 = vmax.f32 %v1355_v55, 0.0 }
 0x8a4   : > { %1677 = vmatpush.msk.msrb.mxu1 %vm1240_vm11, %v1356_v56  ;;  %1679 = vmatpush.msk.msrb.mxu2 %vm1240_vm11, %v1356_v56 }
 0x8a5   : > { %1681 = vmatmul.msk.f32.vlgmr.msrb.gmra.mxu3 %vm457_vm5, %v1356_v56  ;;  %1678 = vmatmul.msk.f32.vlgmr.msrb.gmra.mxu1 %vm1237_vm12, %v1929_v15  ;;  %v1482_v15 = vld [vmem:[%s2347_s7 + $0x18] sm:$0xff] }
 0x8a6   : > { %1680 = vmatmul.msk.f32.vlgmr.msrb.gmra.mxu2 %vm1237_vm12, %v1932_v16  ;;  %1460 = vmatpush.msra.mxu1 %v2120_v26  ;;  %v1481_v16 = vld [vmem:[%s2347_s7 + $0x10] sm:$0xff] }
 0x8a7   : > { %1499 = vmatpush.msra.mxu2 %v1482_v15 }
 0x8a8   : > { %1461 = vmatpush.msra.mxu1 %v2132_v19 }
 0x8a9   : > { %1500 = vmatpush.msra.mxu2 %v1481_v16 }
 0x8aa   : > { %1462 = vmatpush.msra.mxu1 %v2142_v29 }
 0x8ab   : > { %1501 = vmatpush.msra.mxu2 %v1480_v63 }
 0x8ac   : > { %1463 = vmatpush.msra.mxu1 %v2156_v35 }
 0x8ad   : > { %1502 = vmatpush.msra.mxu2 %v1479_v0 }
 0x922   : > { %v1377_v57 = vpop.f32.mrf.mxu1 }
 0x923   : > { %1682 = vmatmul.msk.f32.vlgmr.msrb.gmra.mxu0 %vm457_vm5, %v1377_v57 }
 0x928   : > { %v1419_v5 = vpop.f32.mrf.mxu3 }
 0x929   : > { %v1397_v62 = vpop.f32.mrf.mxu2 }
 0x92a   : > { %1683 = vmatmul.msk.f32.vlgmr.msra.gmra.mxu1 %vm457_vm5, %v1397_v62 }
 0x9a0   : > { %v1442_v1 = vpop.f32.mrf.mxu0 }
 0x9a1   : > { %v1443_v25 = vadd.f32 %v1442_v1, %v1419_v5 }
 0x9a7   : > { %v1465_v26 = vpop.f32.mrf.mxu1 }
 0x9a8   : > { %v1468_v27 = vadd.f32 %v1465_v26, %v1443_v25 }
 0x9aa   : > { %v1469_v19 = vadd.f32 %v2167_v50, %v1468_v27  ;;  %v1483_v50 = vld [vmem:[%s2348_s8] sm:$0x1] }
 0x9ac   : > { %v1470_v28 = vadd.f32 %v1469_v19, %v1233_v31 }
 0x9ae   : > { %v1472_v29 = vsel %vm1471_vm13, %v1470_v28, -inf }
 0x9af   : > { %v1473_v30 = vrot.slane %v1472_v29, 4 }
 0x9b1   : > { %v1474_v35 = vmax.f32 %v1472_v29, %v1473_v30 }
 0x9b3   : > { %v1475_v9 = vrot.slane %v1474_v35, 2 }
 0x9b5   : > { %v1476_v49 = vmax.f32 %v1474_v35, %v1475_v9 }
 0x9b7   : > { %v1477_v42 = vrot.slane %v1476_v49, 1 }
 0x9b9   : > { %v1478_v12 = vmax.f32 %v1476_v49, %v1477_v42 }
 0x9bb   : > { %1684 = vmatmul.msk.f32.vlgmr.msra.gmra.mxu2 %vm457_vm5, %v1478_v12 }
 0xa3e   : > { %v1504_v10 = vpop.f32.mrf.mxu2 }
 0xa3f   : > { %v1505_v13 = vadd.f32 %v1504_v10, %v1483_v50 }
 0xa41   : > { %1507 = vst [vmem:[%s324_s22] sm:$0x1] %v1505_v13 }
 0xa42   : > { %1758 = shalt.err (!%p1755_p3)
}
 0xa43   : > { %1688 = dma.vmem_to_hbm [thread:$0]  (%p1884_p5), %s1520_s23, 16, %s1522_s24, %s1509_s25  }
 0xa44 PF: > { %p1694_p4 = scmp.ge.s32.totalorder %s1793_s12, 2  ;;  %s1533_s28 = sand.u32 1, %s1781_s30  }
 0xa45   : > { %s1534_s16 = scalar_lea.sflag [#allocation3], %s1533_s28 }
 0xa46   : > { %p1691_p7 = pnand %p1694_p4, %p1888_p6 }
 0xa48   : > { %p1692_p8 = pneg %p1691_p7 }
 0xa4a   : > { %1776 = dma.done.wait (%p1692_p8), %s1534_s16, 16  }
 0xa4b   : > { %1778 = vsyncadd (%p1692_p8), %s1534_s16, 4294967280  ;;  %p19_p9 = scmp.ge.s32.totalorder %s1871_s15, 4   ;;  %s2352_s30 = smov %s1785_s10 }
 0xa4c   : > { %s2353_s10 = smov %s1789_s11  ;;  %s2354_s11 = smov %s1882_s18 }
 0xa4d   : > { %s2355_s12 = smov %s1871_s15  ;;  %21 = sbr.rel (!%p19_p9) target bundleno = 3 (0x3), region = 97 }
 0xa52   :  { %1539 = vsyncpa [#allocation3], 1 }
 0xa53   :  { %1541 = vsyncpa [#allocation3 + $0x1], 1 }

</bundles_post_ra>
